<compile_context>
chip_gen: v6e
topology: v6e:2x2x1
jax: 0.10.0
libtpu: 0.0.40
codegen_flags: <defaults>
</compile_context>

<pallas_src>
import functools
import math

import jax
import jax.numpy as jnp
from jax.experimental import pallas as pl
from jax.experimental.pallas import tpu as pltpu


# ----------------------------- Pallas kernel -------------------------------

def _co_spatial_kernel(*refs, interact):
    """One grid step = Bt batches of BOTH HetGraphConv branches, fully fused."""
    if interact:
        (taxi_ref, ride_ref,
         t2t_ref, r2t_ref, r2r_ref, t2r_ref,
         t_wx_ref, t_wh_ref, t_we_ref,
         r_wx_ref, r_wh_ref, r_we_ref,
         t_b_ref, r_b_ref,
         taxi_o_ref, ride_o_ref) = refs
    else:
        (taxi_ref, ride_ref,
         t2t_ref, r2r_ref,
         t_wx_ref, t_wh_ref,
         r_wx_ref, r_wh_ref,
         t_b_ref, r_b_ref,
         taxi_o_ref, ride_o_ref) = refs

    f32 = jnp.float32
    tx = taxi_ref[...].astype(f32)            # (Bt*C_in, L)
    rx = ride_ref[...].astype(f32)

    # Graph mixing: one lane-dense 2-D matmul per adjacency (adjacency was
    # expanded to kron(I_T, mat) in the wrapper, so rows cover all Bt batches).
    t_hom = jnp.dot(tx, t2t_ref[...], preferred_element_type=f32)
    r_hom = jnp.dot(rx, r2r_ref[...], preferred_element_type=f32)

    # Channel mix: per-chunk weights kron(I_Bt, W_chunk) with the p/q GLU
    # halves stacked along rows; the chunk matmuls accumulate directly into
    # one f32 result — no concat scratch, no store->reload serialization.
    t_pre = (jnp.dot(t_wx_ref[...], tx, preferred_element_type=f32)
             + jnp.dot(t_wh_ref[...], t_hom, preferred_element_type=f32)
             + t_b_ref[...])
    r_pre = (jnp.dot(r_wx_ref[...], rx, preferred_element_type=f32)
             + jnp.dot(r_wh_ref[...], r_hom, preferred_element_type=f32)
             + r_b_ref[...])

    if interact:
        t_het = jnp.dot(rx, r2t_ref[...], preferred_element_type=f32)
        r_het = jnp.dot(tx, t2r_ref[...], preferred_element_type=f32)
        t_pre = t_pre + jnp.dot(t_we_ref[...], t_het, preferred_element_type=f32)
        r_pre = r_pre + jnp.dot(r_we_ref[...], r_het, preferred_element_type=f32)

    # GLU: p / q halves sit at an 8-aligned row offset of the same result
    # (vreg-boundary value slice, no masked stores).  Dropout == identity.
    half = taxi_o_ref.shape[0]                # Bt * C_out
    taxi_o_ref[...] = (t_pre[:half] * jax.nn.sigmoid(t_pre[half:])
                       ).astype(taxi_o_ref.dtype)
    ride_o_ref[...] = (r_pre[:half] * jax.nn.sigmoid(r_pre[half:])
                       ).astype(ride_o_ref.dtype)


# ------------------------------ JAX wrapper --------------------------------

def _build_branch_weights(W, b, c_in, c_out, bt):
    """Split the 1x1-conv weight into per-concat-chunk blocks, expand each to
    kron(I_Bt, W_chunk) and stack the p/q GLU halves along rows."""
    W = W.astype(jnp.float32)
    b = b.astype(jnp.float32)
    eye_bt = jnp.eye(bt, dtype=jnp.float32)
    n_chunk = W.shape[1] // c_in
    chunks = []
    for j in range(n_chunk):
        wc = W[:, j * c_in:(j + 1) * c_in]                    # (2*C_out, C_in)
        big = jnp.concatenate([jnp.kron(eye_bt, wc[:c_out]),   # p half
                               jnp.kron(eye_bt, wc[c_out:])],  # q half
                              axis=0)                          # (2*Bt*C_out, Bt*C_in)
        chunks.append(big)
    b_big = jnp.concatenate([jnp.tile(b[:c_out], bt),
                             jnp.tile(b[c_out:], bt)]).reshape(-1, 1)
    return chunks, b_big


def co_spatial_conv(taxi_x, t2t_mat, r2t_mat, ride_x, r2r_mat, t2r_mat,
                    params, *, interact=True):
    """Fused CoSpatialConv.forward (eval mode: dropout == identity).

    taxi_x, ride_x: (B, C_in, T, N); *_mat: (N, N)
    params: taxi_W/ride_W (2*C_out, 3*C_in if interact else 2*C_in),
            taxi_b/ride_b (2*C_out,)
    returns (taxi_out, ride_out), each (B, C_out, T, N)
    """
    B, C_in, T, N = taxi_x.shape
    L = T * N
    two_c_out, k_in = params["taxi_W"].shape
    C_out = two_c_out // 2
    n_chunk = k_in // C_in
    assert n_chunk == (3 if interact else 2)
    out_dtype = taxi_x.dtype
    itemsize = jnp.dtype(out_dtype).itemsize

    # Batch tiling: Bt batches per grid step so Bt*C_in is sublane(8)-aligned;
    # pad B up to a multiple of Bt with zeros if needed (sliced off after).
    bt = 8 // math.gcd(C_in, 8)
    b_pad = (-B) % bt
    B_p = B + b_pad
    # Lane padding: keep every activation/output store 128-lane dense.
    l_pad = (-L) % 128
    L_p = L + l_pad

    def prep_x(x):
        if b_pad:
            x = jnp.pad(x, ((0, b_pad), (0, 0), (0, 0), (0, 0)))
        x = x.reshape(B_p * C_in, L)      # metadata-only (NCHW is contiguous)
        if l_pad:
            x = jnp.pad(x, ((0, 0), (0, l_pad)))
        return x

    taxi_f = prep_x(taxi_x)
    ride_f = prep_x(ride_x)

    # Block-diagonal adjacency kron(I_T, mat): the per-(b,c,t) graph mix
    # x[b,c,t,:] @ M becomes ONE lane-dense 2-D matmul per adjacency.
    # TODO(synk): for production graphs with T*N >~ 1024 replace this (T*N)^2
    #   expansion with the non-kron (B*C_in*T, N)@(N, N) graph mix plus a
    #   kron(W, I_T) channel mix (removes the T^2 VMEM term and the T-times
    #   extra MXU MACs — matters most on v7x's 64 MiB VMEM and on v5e's MXU).
    eye_t = jnp.eye(T, dtype=jnp.float32)

    def prep_mat(m):
        big = jnp.kron(eye_t, m.astype(jnp.float32))
        if l_pad:
            big = jnp.pad(big, ((0, l_pad), (0, l_pad)))
        return big

    t2t_big = prep_mat(t2t_mat)
    r2r_big = prep_mat(r2r_mat)

    t_ws, t_b = _build_branch_weights(params["taxi_W"], params["taxi_b"],
                                      C_in, C_out, bt)
    r_ws, r_b = _build_branch_weights(params["ride_W"], params["ride_b"],
                                      C_in, C_out, bt)

    x_spec = pl.BlockSpec((bt * C_in, L_p), lambda i: (i, 0))
    o_spec = pl.BlockSpec((bt * C_out, L_p), lambda i: (i, 0))
    mat_spec = pl.BlockSpec((L_p, L_p), lambda i: (0, 0))
    w_spec = pl.BlockSpec((2 * bt * C_out, bt * C_in), lambda i: (0, 0))
    b_spec = pl.BlockSpec((2 * bt * C_out, 1), lambda i: (0, 0))
    # TODO(synk): mark the grid-invariant mat/w/b specs pipeline_mode=
    #   pl.Buffered(1) to halve their VMEM footprint (most relevant on v7x)
    #   once that path is exercised/needed at production sizes.

    n_graph = 2 * (n_chunk - 1)          # 4 if interact else 2
    if interact:
        inputs = [taxi_f, ride_f,
                  t2t_big, prep_mat(r2t_mat), r2r_big, prep_mat(t2r_mat),
                  t_ws[0], t_ws[1], t_ws[2], r_ws[0], r_ws[1], r_ws[2],
                  t_b, r_b]
        in_specs = [x_spec, x_spec,
                    mat_spec, mat_spec, mat_spec, mat_spec,
                    w_spec, w_spec, w_spec, w_spec, w_spec, w_spec,
                    b_spec, b_spec]
    else:
        inputs = [taxi_f, ride_f, t2t_big, r2r_big,
                  t_ws[0], t_ws[1], r_ws[0], r_ws[1], t_b, r_b]
        in_specs = [x_spec, x_spec, mat_spec, mat_spec,
                    w_spec, w_spec, w_spec, w_spec, b_spec, b_spec]

    out_shape = (jax.ShapeDtypeStruct((B_p * C_out, L_p), out_dtype),
                 jax.ShapeDtypeStruct((B_p * C_out, L_p), out_dtype))

    # Honest cost estimate: algorithmic FLOPs (graph mix at N^2 per node-row,
    # not the kron-inflated (T*N)^2) and real dtype sizes.
    flops = int(n_graph * 2 * B * C_in * T * N * N
                + 2 * 2 * B * (2 * C_out) * k_in * L)
    transcendentals = int(2 * B * C_out * L)
    bytes_accessed = int(itemsize * 2 * B * C_in * L
                         + itemsize * 2 * B * C_out * L
                         + 4 * n_graph * L_p * L_p
                         + 4 * (2 * n_chunk * 2 * bt * C_out * bt * C_in
                                + 2 * 2 * bt * C_out))
    cost = pl.CostEstimate(flops=flops, transcendentals=transcendentals,
                           bytes_accessed=bytes_accessed)

    # VMEM budget from the actual per-step blocks (headroom for the default
    # double-buffering of pipelined operands).
    block_bytes = int(itemsize * 2 * bt * C_in * L_p
                      + itemsize * 2 * bt * C_out * L_p
                      + 4 * n_graph * L_p * L_p
                      + 4 * 2 * n_chunk * 2 * bt * C_out * bt * C_in
                      + 4 * 2 * 2 * bt * C_out)
    vmem_limit = int(min(max(3 * block_bytes, 32 * 2 ** 20), 100 * 2 ** 20))

    # TODO(synk): on v7x, if both TensorCores must be used with a tiny batch
    #   grid, shard the batch-tile axis with pltpu.CORE_PARALLEL instead of
    #   plain "parallel".
    cparams = pltpu.CompilerParams(dimension_semantics=("parallel",),
                                   vmem_limit_bytes=vmem_limit)

    taxi_o, ride_o = pl.pallas_call(
        functools.partial(_co_spatial_kernel, interact=interact),
        out_shape=out_shape,
        grid_spec=pltpu.PrefetchScalarGridSpec(
            num_scalar_prefetch=0,
            grid=(B_p // bt,),
            in_specs=in_specs,
            out_specs=[o_spec, o_spec],
        ),
        compiler_params=cparams,
        cost_estimate=cost,
    )(*inputs)

    def unpack(o):
        o = o.reshape(B_p, C_out, L_p)
        if b_pad or l_pad:
            o = o[:B, :, :L]
        return o.reshape(B, C_out, T, N)

    return unpack(taxi_o), unpack(ride_o)


# --------------------------- pure-JAX reference ----------------------------

def _het_ref(hom_x, hom_mat, het_x, het_mat, W, b, interact):
    hom_conv = jnp.einsum('bcln,nm->bclm', hom_x, hom_mat)
    if interact:
        het_conv = jnp.einsum('bcln,nm->bclm', het_x, het_mat)
        cat = jnp.concatenate([hom_x, hom_conv, het_conv], axis=1)
    else:
        cat = jnp.concatenate([hom_x, hom_conv], axis=1)
    out = jnp.einsum('oc,bcln->boln', W, cat) + b[None, :, None, None]
    C_out = W.shape[0] // 2
    return out[:, :C_out] * jax.nn.sigmoid(out[:, C_out:])


# ---------------------------------- main -----------------------------------

if __name__ == "__main__":
    B, C_in, T, N, C_out = 2, 4, 8, 16, 8

    key = jax.random.PRNGKey(0)
    ks = jax.random.split(key, 14)
    taxi_x = jax.random.normal(ks[0], (B, C_in, T, N), jnp.float32)
    ride_x = jax.random.normal(ks[1], (B, C_in, T, N), jnp.float32)
    t2t = jax.random.normal(ks[2], (N, N), jnp.float32)
    r2t = jax.random.normal(ks[3], (N, N), jnp.float32)
    r2r = jax.random.normal(ks[4], (N, N), jnp.float32)
    t2r = jax.random.normal(ks[5], (N, N), jnp.float32)

    # Deterministic parameters: Conv2d(kin -> 2*C_out, 1x1) per branch.
    params_i = {  # interact=True (kin = 3*C_in)
        "taxi_W": 0.1 * jax.random.normal(ks[6], (2 * C_out, 3 * C_in), jnp.float32),
        "taxi_b": 0.1 * jax.random.normal(ks[7], (2 * C_out,), jnp.float32),
        "ride_W": 0.1 * jax.random.normal(ks[8], (2 * C_out, 3 * C_in), jnp.float32),
        "ride_b": 0.1 * jax.random.normal(ks[9], (2 * C_out,), jnp.float32),
    }
    params_n = {  # interact=False (kin = 2*C_in)
        "taxi_W": 0.1 * jax.random.normal(ks[10], (2 * C_out, 2 * C_in), jnp.float32),
        "taxi_b": 0.1 * jax.random.normal(ks[11], (2 * C_out,), jnp.float32),
        "ride_W": 0.1 * jax.random.normal(ks[12], (2 * C_out, 2 * C_in), jnp.float32),
        "ride_b": 0.1 * jax.random.normal(ks[13], (2 * C_out,), jnp.float32),
    }

    fwd_i = jax.jit(lambda *a: co_spatial_conv(*a, params_i, interact=True))
    fwd_n = jax.jit(lambda *a: co_spatial_conv(*a, params_n, interact=False))

    out_i = fwd_i(taxi_x, t2t, r2t, ride_x, r2r, t2r)
    out_n = fwd_n(taxi_x, t2t, r2t, ride_x, r2r, t2r)
    jax.block_until_ready((out_i, out_n))

    # Verify against the pure-JAX reference for both interact modes.
    for (taxi_out, ride_out), p, inter in ((out_i, params_i, True),
                                           (out_n, params_n, False)):
        taxi_ref = _het_ref(taxi_x, t2t, ride_x, r2t,
                            p["taxi_W"], p["taxi_b"], inter)
        ride_ref = _het_ref(ride_x, r2r, taxi_x, t2r,
                            p["ride_W"], p["ride_b"], inter)
        assert taxi_out.shape == (B, C_out, T, N)
        assert ride_out.shape == (B, C_out, T, N)
        assert jnp.allclose(taxi_out, taxi_ref, atol=1e-4, rtol=1e-4)
        assert jnp.allclose(ride_out, ride_ref, atol=1e-4, rtol=1e-4)

    print("KERNEL_OK")
</pallas_src>

<mosaic_0001>
module attributes {stable_mosaic.version = 11 : i64} {
  func.func @_co_spatial_kernel(%arg0: i32, %arg1: memref<8x128xf32, #tpu.memory_space<vmem>>, %arg2: memref<8x128xf32, #tpu.memory_space<vmem>>, %arg3: memref<128x128xf32, #tpu.memory_space<vmem>>, %arg4: memref<128x128xf32, #tpu.memory_space<vmem>>, %arg5: memref<128x128xf32, #tpu.memory_space<vmem>>, %arg6: memref<128x128xf32, #tpu.memory_space<vmem>>, %arg7: memref<32x8xf32, #tpu.memory_space<vmem>>, %arg8: memref<32x8xf32, #tpu.memory_space<vmem>>, %arg9: memref<32x8xf32, #tpu.memory_space<vmem>>, %arg10: memref<32x8xf32, #tpu.memory_space<vmem>>, %arg11: memref<32x8xf32, #tpu.memory_space<vmem>>, %arg12: memref<32x8xf32, #tpu.memory_space<vmem>>, %arg13: memref<32x1xf32, #tpu.memory_space<vmem>>, %arg14: memref<32x1xf32, #tpu.memory_space<vmem>>, %arg15: memref<16x128xf32, #tpu.memory_space<vmem>>, %arg16: memref<16x128xf32, #tpu.memory_space<vmem>>) attributes {dimension_semantics = [#tpu.dimension_semantics<parallel>], iteration_bounds = array<i64: 1>, scalar_prefetch = 0 : i64, scratch_operands = 0 : i64, tpu.core_type = #tpu.core_type<tc>, window_params = [{transform_indices = @transform_0, window_bounds = array<i64: 8, 128>}, {transform_indices = @transform_1, window_bounds = array<i64: 8, 128>}, {pipeline_mode = #tpu.pipeline_mode<synchronous>, transform_indices = @transform_2, window_bounds = array<i64: 128, 128>}, {pipeline_mode = #tpu.pipeline_mode<synchronous>, transform_indices = @transform_3, window_bounds = array<i64: 128, 128>}, {pipeline_mode = #tpu.pipeline_mode<synchronous>, transform_indices = @transform_4, window_bounds = array<i64: 128, 128>}, {pipeline_mode = #tpu.pipeline_mode<synchronous>, transform_indices = @transform_5, window_bounds = array<i64: 128, 128>}, {pipeline_mode = #tpu.pipeline_mode<synchronous>, transform_indices = @transform_6, window_bounds = array<i64: 32, 8>}, {pipeline_mode = #tpu.pipeline_mode<synchronous>, transform_indices = @transform_7, window_bounds = array<i64: 32, 8>}, {pipeline_mode = #tpu.pipeline_mode<synchronous>, transform_indices = @transform_8, window_bounds = array<i64: 32, 8>}, {pipeline_mode = #tpu.pipeline_mode<synchronous>, transform_indices = @transform_9, window_bounds = array<i64: 32, 8>}, {pipeline_mode = #tpu.pipeline_mode<synchronous>, transform_indices = @transform_10, window_bounds = array<i64: 32, 8>}, {pipeline_mode = #tpu.pipeline_mode<synchronous>, transform_indices = @transform_11, window_bounds = array<i64: 32, 8>}, {pipeline_mode = #tpu.pipeline_mode<synchronous>, transform_indices = @transform_12, window_bounds = array<i64: 32, 1>}, {pipeline_mode = #tpu.pipeline_mode<synchronous>, transform_indices = @transform_13, window_bounds = array<i64: 32, 1>}, {transform_indices = @transform_14, window_bounds = array<i64: 16, 128>}, {transform_indices = @transform_15, window_bounds = array<i64: 16, 128>}]} {
    %c0 = arith.constant 0 : index
    %c0_0 = arith.constant 0 : index
    %0 = vector.load %arg1[%c0, %c0_0] : memref<8x128xf32, #tpu.memory_space<vmem>>, vector<8x128xf32>
    %c0_1 = arith.constant 0 : index
    %c0_2 = arith.constant 0 : index
    %1 = vector.load %arg2[%c0_1, %c0_2] : memref<8x128xf32, #tpu.memory_space<vmem>>, vector<8x128xf32>
    %c0_3 = arith.constant 0 : index
    %c0_4 = arith.constant 0 : index
    %2 = vector.load %arg3[%c0_3, %c0_4] : memref<128x128xf32, #tpu.memory_space<vmem>>, vector<128x128xf32>
    %cst = arith.constant dense<0.000000e+00> : vector<8x128xf32>
    %3 = tpu.matmul %0, %2, %cst {dimension_numbers = #tpu.dot_dimension_numbers<[1], [0], [0], [1], [0, 0, 1, 1], [], []>} : vector<8x128xf32>, vector<128x128xf32>, vector<8x128xf32> -> vector<8x128xf32>
    %c0_5 = arith.constant 0 : index
    %c0_6 = arith.constant 0 : index
    %4 = vector.load %arg5[%c0_5, %c0_6] : memref<128x128xf32, #tpu.memory_space<vmem>>, vector<128x128xf32>
    %cst_7 = arith.constant dense<0.000000e+00> : vector<8x128xf32>
    %5 = tpu.matmul %1, %4, %cst_7 {dimension_numbers = #tpu.dot_dimension_numbers<[1], [0], [0], [1], [0, 0, 1, 1], [], []>} : vector<8x128xf32>, vector<128x128xf32>, vector<8x128xf32> -> vector<8x128xf32>
    %c0_8 = arith.constant 0 : index
    %c0_9 = arith.constant 0 : index
    %6 = vector.load %arg7[%c0_8, %c0_9] : memref<32x8xf32, #tpu.memory_space<vmem>>, vector<32x8xf32>
    %cst_10 = arith.constant dense<0.000000e+00> : vector<32x128xf32>
    %7 = tpu.matmul %6, %0, %cst_10 {dimension_numbers = #tpu.dot_dimension_numbers<[1], [0], [0], [1], [0, 0, 1, 1], [], []>} : vector<32x8xf32>, vector<8x128xf32>, vector<32x128xf32> -> vector<32x128xf32>
    %c0_11 = arith.constant 0 : index
    %c0_12 = arith.constant 0 : index
    %8 = vector.load %arg8[%c0_11, %c0_12] : memref<32x8xf32, #tpu.memory_space<vmem>>, vector<32x8xf32>
    %cst_13 = arith.constant dense<0.000000e+00> : vector<32x128xf32>
    %9 = tpu.matmul %8, %3, %cst_13 {dimension_numbers = #tpu.dot_dimension_numbers<[1], [0], [0], [1], [0, 0, 1, 1], [], []>} : vector<32x8xf32>, vector<8x128xf32>, vector<32x128xf32> -> vector<32x128xf32>
    %10 = arith.addf %7, %9 : vector<32x128xf32>
    %c0_14 = arith.constant 0 : index
    %c0_15 = arith.constant 0 : index
    %11 = vector.load %arg13[%c0_14, %c0_15] : memref<32x1xf32, #tpu.memory_space<vmem>>, vector<32x1xf32>
    %12 = vector.broadcast %11 : vector<32x1xf32> to vector<32x128xf32>
    %13 = arith.addf %10, %12 : vector<32x128xf32>
    %c0_16 = arith.constant 0 : index
    %c0_17 = arith.constant 0 : index
    %14 = vector.load %arg10[%c0_16, %c0_17] : memref<32x8xf32, #tpu.memory_space<vmem>>, vector<32x8xf32>
    %cst_18 = arith.constant dense<0.000000e+00> : vector<32x128xf32>
    %15 = tpu.matmul %14, %1, %cst_18 {dimension_numbers = #tpu.dot_dimension_numbers<[1], [0], [0], [1], [0, 0, 1, 1], [], []>} : vector<32x8xf32>, vector<8x128xf32>, vector<32x128xf32> -> vector<32x128xf32>
    %c0_19 = arith.constant 0 : index
    %c0_20 = arith.constant 0 : index
    %16 = vector.load %arg11[%c0_19, %c0_20] : memref<32x8xf32, #tpu.memory_space<vmem>>, vector<32x8xf32>
    %cst_21 = arith.constant dense<0.000000e+00> : vector<32x128xf32>
    %17 = tpu.matmul %16, %5, %cst_21 {dimension_numbers = #tpu.dot_dimension_numbers<[1], [0], [0], [1], [0, 0, 1, 1], [], []>} : vector<32x8xf32>, vector<8x128xf32>, vector<32x128xf32> -> vector<32x128xf32>
    %18 = arith.addf %15, %17 : vector<32x128xf32>
    %c0_22 = arith.constant 0 : index
    %c0_23 = arith.constant 0 : index
    %19 = vector.load %arg14[%c0_22, %c0_23] : memref<32x1xf32, #tpu.memory_space<vmem>>, vector<32x1xf32>
    %20 = vector.broadcast %19 : vector<32x1xf32> to vector<32x128xf32>
    %21 = arith.addf %18, %20 : vector<32x128xf32>
    %c0_24 = arith.constant 0 : index
    %c0_25 = arith.constant 0 : index
    %22 = vector.load %arg4[%c0_24, %c0_25] : memref<128x128xf32, #tpu.memory_space<vmem>>, vector<128x128xf32>
    %cst_26 = arith.constant dense<0.000000e+00> : vector<8x128xf32>
    %23 = tpu.matmul %1, %22, %cst_26 {dimension_numbers = #tpu.dot_dimension_numbers<[1], [0], [0], [1], [0, 0, 1, 1], [], []>} : vector<8x128xf32>, vector<128x128xf32>, vector<8x128xf32> -> vector<8x128xf32>
    %c0_27 = arith.constant 0 : index
    %c0_28 = arith.constant 0 : index
    %24 = vector.load %arg6[%c0_27, %c0_28] : memref<128x128xf32, #tpu.memory_space<vmem>>, vector<128x128xf32>
    %cst_29 = arith.constant dense<0.000000e+00> : vector<8x128xf32>
    %25 = tpu.matmul %0, %24, %cst_29 {dimension_numbers = #tpu.dot_dimension_numbers<[1], [0], [0], [1], [0, 0, 1, 1], [], []>} : vector<8x128xf32>, vector<128x128xf32>, vector<8x128xf32> -> vector<8x128xf32>
    %c0_30 = arith.constant 0 : index
    %c0_31 = arith.constant 0 : index
    %26 = vector.load %arg9[%c0_30, %c0_31] : memref<32x8xf32, #tpu.memory_space<vmem>>, vector<32x8xf32>
    %cst_32 = arith.constant dense<0.000000e+00> : vector<32x128xf32>
    %27 = tpu.matmul %26, %23, %cst_32 {dimension_numbers = #tpu.dot_dimension_numbers<[1], [0], [0], [1], [0, 0, 1, 1], [], []>} : vector<32x8xf32>, vector<8x128xf32>, vector<32x128xf32> -> vector<32x128xf32>
    %28 = arith.addf %13, %27 : vector<32x128xf32>
    %c0_33 = arith.constant 0 : index
    %c0_34 = arith.constant 0 : index
    %29 = vector.load %arg12[%c0_33, %c0_34] : memref<32x8xf32, #tpu.memory_space<vmem>>, vector<32x8xf32>
    %cst_35 = arith.constant dense<0.000000e+00> : vector<32x128xf32>
    %30 = tpu.matmul %29, %25, %cst_35 {dimension_numbers = #tpu.dot_dimension_numbers<[1], [0], [0], [1], [0, 0, 1, 1], [], []>} : vector<32x8xf32>, vector<8x128xf32>, vector<32x128xf32> -> vector<32x128xf32>
    %31 = arith.addf %21, %30 : vector<32x128xf32>
    %32 = vector.extract_strided_slice %28 {offsets = [0, 0], sizes = [16, 128], strides = [1, 1]} : vector<32x128xf32> to vector<16x128xf32>
    %33 = vector.extract_strided_slice %28 {offsets = [16, 0], sizes = [16, 128], strides = [1, 1]} : vector<32x128xf32> to vector<16x128xf32>
    %34 = arith.negf %33 : vector<16x128xf32>
    %35 = math.exp %34 : vector<16x128xf32>
    %cst_36 = arith.constant 1.000000e+00 : f32
    %36 = vector.broadcast %cst_36 : f32 to vector<16x128xf32>
    %37 = arith.addf %36, %35 : vector<16x128xf32>
    %38 = arith.divf %36, %37 : vector<16x128xf32>
    %39 = arith.mulf %32, %38 : vector<16x128xf32>
    %c0_37 = arith.constant 0 : index
    %c0_38 = arith.constant 0 : index
    %40 = vector.load %arg15[%c0_37, %c0_38] : memref<16x128xf32, #tpu.memory_space<vmem>>, vector<16x128xf32>
    tpu.vector_store %arg15[%c0_37, %c0_38], %39 {strides = array<i32>} : memref<16x128xf32, #tpu.memory_space<vmem>>, vector<16x128xf32>,
    %41 = vector.extract_strided_slice %31 {offsets = [0, 0], sizes = [16, 128], strides = [1, 1]} : vector<32x128xf32> to vector<16x128xf32>
    %42 = vector.extract_strided_slice %31 {offsets = [16, 0], sizes = [16, 128], strides = [1, 1]} : vector<32x128xf32> to vector<16x128xf32>
    %43 = arith.negf %42 : vector<16x128xf32>
    %44 = math.exp %43 : vector<16x128xf32>
    %cst_39 = arith.constant 1.000000e+00 : f32
    %45 = vector.broadcast %cst_39 : f32 to vector<16x128xf32>
    %46 = arith.addf %45, %44 : vector<16x128xf32>
    %47 = arith.divf %45, %46 : vector<16x128xf32>
    %48 = arith.mulf %41, %47 : vector<16x128xf32>
    %c0_40 = arith.constant 0 : index
    %c0_41 = arith.constant 0 : index
    %49 = vector.load %arg16[%c0_40, %c0_41] : memref<16x128xf32, #tpu.memory_space<vmem>>, vector<16x128xf32>
    tpu.vector_store %arg16[%c0_40, %c0_41], %48 {strides = array<i32>} : memref<16x128xf32, #tpu.memory_space<vmem>>, vector<16x128xf32>,
    return
  }
  func.func @transform_0(%arg0: i32) -> (i32, i32) {
    %c0_i32 = arith.constant 0 : i32
    %c0_i32_0 = arith.constant 0 : i32
    return %arg0, %c0_i32 : i32, i32
  }
  func.func @transform_1(%arg0: i32) -> (i32, i32) {
    %c0_i32 = arith.constant 0 : i32
    %c0_i32_0 = arith.constant 0 : i32
    return %arg0, %c0_i32 : i32, i32
  }
  func.func @transform_2(%arg0: i32) -> (i32, i32) {
    %c0_i32 = arith.constant 0 : i32
    %c0_i32_0 = arith.constant 0 : i32
    %c0_i32_1 = arith.constant 0 : i32
    return %c0_i32, %c0_i32_0 : i32, i32
  }
  func.func @transform_3(%arg0: i32) -> (i32, i32) {
    %c0_i32 = arith.constant 0 : i32
    %c0_i32_0 = arith.constant 0 : i32
    %c0_i32_1 = arith.constant 0 : i32
    return %c0_i32, %c0_i32_0 : i32, i32
  }
  func.func @transform_4(%arg0: i32) -> (i32, i32) {
    %c0_i32 = arith.constant 0 : i32
    %c0_i32_0 = arith.constant 0 : i32
    %c0_i32_1 = arith.constant 0 : i32
    return %c0_i32, %c0_i32_0 : i32, i32
  }
  func.func @transform_5(%arg0: i32) -> (i32, i32) {
    %c0_i32 = arith.constant 0 : i32
    %c0_i32_0 = arith.constant 0 : i32
    %c0_i32_1 = arith.constant 0 : i32
    return %c0_i32, %c0_i32_0 : i32, i32
  }
  func.func @transform_6(%arg0: i32) -> (i32, i32) {
    %c0_i32 = arith.constant 0 : i32
    %c0_i32_0 = arith.constant 0 : i32
    %c0_i32_1 = arith.constant 0 : i32
    return %c0_i32, %c0_i32_0 : i32, i32
  }
  func.func @transform_7(%arg0: i32) -> (i32, i32) {
    %c0_i32 = arith.constant 0 : i32
    %c0_i32_0 = arith.constant 0 : i32
    %c0_i32_1 = arith.constant 0 : i32
    return %c0_i32, %c0_i32_0 : i32, i32
  }
  func.func @transform_8(%arg0: i32) -> (i32, i32) {
    %c0_i32 = arith.constant 0 : i32
    %c0_i32_0 = arith.constant 0 : i32
    %c0_i32_1 = arith.constant 0 : i32
    return %c0_i32, %c0_i32_0 : i32, i32
  }
  func.func @transform_9(%arg0: i32) -> (i32, i32) {
    %c0_i32 = arith.constant 0 : i32
    %c0_i32_0 = arith.constant 0 : i32
    %c0_i32_1 = arith.constant 0 : i32
    return %c0_i32, %c0_i32_0 : i32, i32
  }
  func.func @transform_10(%arg0: i32) -> (i32, i32) {
    %c0_i32 = arith.constant 0 : i32
    %c0_i32_0 = arith.constant 0 : i32
    %c0_i32_1 = arith.constant 0 : i32
    return %c0_i32, %c0_i32_0 : i32, i32
  }
  func.func @transform_11(%arg0: i32) -> (i32, i32) {
    %c0_i32 = arith.constant 0 : i32
    %c0_i32_0 = arith.constant 0 : i32
    %c0_i32_1 = arith.constant 0 : i32
    return %c0_i32, %c0_i32_0 : i32, i32
  }
  func.func @transform_12(%arg0: i32) -> (i32, i32) {
    %c0_i32 = arith.constant 0 : i32
    %c0_i32_0 = arith.constant 0 : i32
    %c0_i32_1 = arith.constant 0 : i32
    return %c0_i32, %c0_i32_0 : i32, i32
  }
  func.func @transform_13(%arg0: i32) -> (i32, i32) {
    %c0_i32 = arith.constant 0 : i32
    %c0_i32_0 = arith.constant 0 : i32
    %c0_i32_1 = arith.constant 0 : i32
    return %c0_i32, %c0_i32_0 : i32, i32
  }
  func.func @transform_14(%arg0: i32) -> (i32, i32) {
    %c0_i32 = arith.constant 0 : i32
    %c0_i32_0 = arith.constant 0 : i32
    return %arg0, %c0_i32 : i32, i32
  }
  func.func @transform_15(%arg0: i32) -> (i32, i32) {
    %c0_i32 = arith.constant 0 : i32
    %c0_i32_0 = arith.constant 0 : i32
    return %arg0, %c0_i32 : i32, i32
  }
}

</mosaic_0001>

<bundles_post_ra>
// kernel: tile.22
= control target key start
LH: loop header
LB: loop body
LE: loop exit
PB: predicated region body
PF: predicated region fallthrough
CT: control target
= control target key end

     0   :  { %s22_s0 = inlined_call_operand.vmem [shape: f32[8], index: 0, kind: input, shape index: {}]   ;;  %s23_s1 = inlined_call_operand.vmem [shape: f32[2,8], index: 1, kind: output, shape index: {}]  }
   0x1   :  { %v4_v0 = vld [vmem:[%s22_s0] ss:$0 sm:$0xff] }
   0x2   :  { %5 = vst [vmem:[%s23_s1] sm:$0x3] %v4_v0 }

// kernel: tile.23
= control target key start
LH: loop header
LB: loop body
LE: loop exit
PB: predicated region body
PF: predicated region fallthrough
CT: control target
= control target key end

     0   :  { %vm8_vm0 = vcmask 64512   ;;  %vm14_vm1 = vcmask 130112   ;;  %s42_s0 = inlined_call_operand.vmem [shape: f32[2,8], index: 0, kind: input, shape index: {}]   ;;  %s43_s1 = inlined_call_operand.vmem [shape: f32[16], index: 1, kind: output, shape index: {}]  }
   0x1   :  { %v5_v0 = vld [vmem:[%s42_s0] sm:$0x3]  ;;  %s25_s0 = smov 8  }
   0x2   :  { %6 = vst [vmem:[#allocation1] sm:$0x3] %v5_v0 }
   0x9   :  { %v11_v1 = vld [vmem:[#allocation1 + $0x1] sm:$0x1]   ;;  %v7_v2 = vld [vmem:[#allocation1] sm:$0x1]  }
   0xa   :  { %12 = vrot.lane.b32.xlu0 %v11_v1, %s25_s0  ;;  %9 = vst.msk [vmem:[#allocation0] sm:$0x1] %vm8_vm0, %v7_v2  }
  0x7c   :  { %v13_v3 = vpop.permute.xlu0 %12  }
  0x7d   :  { %15 = vst.msk [vmem:[#allocation0] sm:$0x1] %vm14_vm1, %v13_v3  }
  0x84   :  { %v20_v4 = vld [vmem:[#allocation0] sm:$0x1] }
  0x85   :  { %23 = vst [vmem:[%s43_s1] sm:$0x1] %v20_v4 }

// kernel: _lambda_.1
= control target key start
LH: loop header
LB: loop body
LE: loop exit
PB: predicated region body
PF: predicated region fallthrough
CT: control target
= control target key end

     0   :  { %v1441_v0 = vmov 0.0   ;;  %vm1442_vm0 = vmmov 0   ;;  %vm231_vm1 = vcmask 64512   ;;  %v1443_v61 = vmov 0   ;;  %s1962_s2 = inlined_call_operand.vmem [shape: f32[128,128], index: 2, kind: input, shape index: {}]   ;;  %s1963_s4 = inlined_call_operand.vmem [shape: f32[128,128], index: 4, kind: input, shape index: {}]   ;;  %s1964_s0 = inlined_call_operand.vmem [shape: f32[8,128], index: 0, kind: input, shape index: {}]   ;;  %s1965_s1 = inlined_call_operand.vmem [shape: f32[8,128], index: 1, kind: input, shape index: {}]   ;;  %s1966_s6 = inlined_call_operand.vmem [shape: f32[32,8], index: 6, kind: input, shape index: {}]   ;;  %s1967_s9 = inlined_call_operand.vmem [shape: f32[32,8], index: 9, kind: input, shape index: {}]   ;;  %s1968_s5 = inlined_call_operand.vmem [shape: f32[128,128], index: 5, kind: input, shape index: {}]   ;;  %s1969_s7 = inlined_call_operand.vmem [shape: f32[32,8], index: 7, kind: input, shape index: {}]   ;;  %s1970_s11 = inlined_call_operand.vmem [shape: f32[32,8], index: 11, kind: input, shape index: {}]   ;;  %s1971_s13 = inlined_call_operand.vmem [shape: f32[32,1], index: 13, kind: input, shape index: {}]   ;;  %s1972_s12 = inlined_call_operand.vmem [shape: f32[32,1], index: 12, kind: input, shape index: {}]   ;;  %s1973_s10 = inlined_call_operand.vmem [shape: f32[32,8], index: 10, kind: input, shape index: {}]   ;;  %s1974_s3 = inlined_call_operand.vmem [shape: f32[128,128], index: 3, kind: input, shape index: {}]   ;;  %s1975_s8 = inlined_call_operand.vmem [shape: f32[32,8], index: 8, kind: input, shape index: {}]   ;;  %s1976_s15 = inlined_call_operand.vmem [shape: f32[16,128], index: 15, kind: output, shape index: {1}]   ;;  %s1977_s14 = inlined_call_operand.vmem [shape: f32[16,128], index: 14, kind: output, shape index: {0}]  }
   0x1   :  { %1232 = vmatprep.subr.mxu0 %v1441_v0  ;;  %1267 = vmatprep.subr.mxu1 %v1441_v0  ;;  %v66_v1 = vld [vmem:[%s1962_s2 + $0x78] sm:$0xff]  ;;  %v65_v3 = vld [vmem:[%s1962_s2 + $0x70] sm:$0xff]  ;;  %v64_v5 = vld [vmem:[%s1962_s2 + $0x68] sm:$0xff] }
   0x2   :  { %v152_v2 = vld [vmem:[%s1963_s4 + $0x78] sm:$0xff]  ;;  %1233 = vmatpush3.msra.mxu0 %v66_v1  ;;  %v151_v4 = vld [vmem:[%s1963_s4 + $0x70] sm:$0xff]  ;;  %v150_v6 = vld [vmem:[%s1963_s4 + $0x68] sm:$0xff]  ;;  %1264 = vmatprep.mubr.msk.f32.mxu0 %vm1442_vm0, %v1441_v0 }
   0x3   :  { %1268 = vmatpush3.msra.mxu1 %v152_v2  ;;  %1234 = vmatprep.subr.mxu0 %v1441_v0  ;;  %v63_v7 = vld [vmem:[%s1962_s2 + $0x60] sm:$0xff]  ;;  %v62_v9 = vld [vmem:[%s1962_s2 + $0x58] sm:$0xff]  ;;  %v61_v11 = vld [vmem:[%s1962_s2 + $0x50] sm:$0xff] }
   0x4   :  { %1269 = vmatprep.subr.mxu1 %v1441_v0  ;;  %1235 = vmatpush3.msra.mxu0 %v65_v3  ;;  %v149_v8 = vld [vmem:[%s1963_s4 + $0x60] sm:$0xff]  ;;  %v148_v10 = vld [vmem:[%s1963_s4 + $0x58] sm:$0xff]  ;;  %v147_v12 = vld [vmem:[%s1963_s4 + $0x50] sm:$0xff] }
   0x5   :  { %1270 = vmatpush3.msra.mxu1 %v151_v4  ;;  %1236 = vmatprep.subr.mxu0 %v1441_v0  ;;  %v60_v13 = vld [vmem:[%s1962_s2 + $0x48] sm:$0xff]  ;;  %v59_v15 = vld [vmem:[%s1962_s2 + $0x40] sm:$0xff]  ;;  %v58_v17 = vld [vmem:[%s1962_s2 + $0x38] sm:$0xff] }
   0x6   :  { %1271 = vmatprep.subr.mxu1 %v1441_v0  ;;  %1237 = vmatpush3.msra.mxu0 %v64_v5  ;;  %v146_v14 = vld [vmem:[%s1963_s4 + $0x48] sm:$0xff]  ;;  %v145_v16 = vld [vmem:[%s1963_s4 + $0x40] sm:$0xff]  ;;  %v144_v18 = vld [vmem:[%s1963_s4 + $0x38] sm:$0xff] }
   0x7   :  { %1272 = vmatpush3.msra.mxu1 %v150_v6  ;;  %1238 = vmatprep.subr.mxu0 %v1441_v0  ;;  %v57_v19 = vld [vmem:[%s1962_s2 + $0x30] sm:$0xff]  ;;  %v56_v21 = vld [vmem:[%s1962_s2 + $0x28] sm:$0xff]  ;;  %v55_v23 = vld [vmem:[%s1962_s2 + $0x20] sm:$0xff] }
   0x8   :  { %1273 = vmatprep.subr.mxu1 %v1441_v0  ;;  %1239 = vmatpush3.msra.mxu0 %v63_v7  ;;  %v143_v20 = vld [vmem:[%s1963_s4 + $0x30] sm:$0xff]  ;;  %v142_v22 = vld [vmem:[%s1963_s4 + $0x28] sm:$0xff]  ;;  %v141_v24 = vld [vmem:[%s1963_s4 + $0x20] sm:$0xff] }
   0x9   :  { %1274 = vmatpush3.msra.mxu1 %v149_v8  ;;  %1240 = vmatprep.subr.mxu0 %v1441_v0  ;;  %v54_v25 = vld [vmem:[%s1962_s2 + $0x18] sm:$0xff]  ;;  %v53_v27 = vld [vmem:[%s1962_s2 + $0x10] sm:$0xff]  ;;  %v52_v29 = vld [vmem:[%s1962_s2 + $0x8] sm:$0xff] }
   0xa   :  { %1275 = vmatprep.subr.mxu1 %v1441_v0  ;;  %1241 = vmatpush3.msra.mxu0 %v62_v9  ;;  %v140_v26 = vld [vmem:[%s1963_s4 + $0x18] sm:$0xff]  ;;  %v139_v28 = vld [vmem:[%s1963_s4 + $0x10] sm:$0xff]  ;;  %v138_v30 = vld [vmem:[%s1963_s4 + $0x8] sm:$0xff] }
   0xb   :  { %1276 = vmatpush3.msra.mxu1 %v148_v10  ;;  %1242 = vmatprep.subr.mxu0 %v1441_v0  ;;  %v51_v31 = vld [vmem:[%s1962_s2] sm:$0xff]  ;;  %v224_v36 = vld [vmem:[%s1966_s6 + $0x8] sm:$0xff]  ;;  %v225_v37 = vld [vmem:[%s1966_s6 + $0x10] sm:$0xff] }
   0xc   :  { %1277 = vmatprep.subr.mxu1 %v1441_v0  ;;  %1243 = vmatpush3.msra.mxu0 %v61_v11  ;;  %v137_v32 = vld [vmem:[%s1963_s4] sm:$0xff]  ;;  %v226_v38 = vld [vmem:[%s1966_s6 + $0x18] sm:$0xff]  ;;  %v455_v40 = vld [vmem:[%s1967_s9 + $0x8] sm:$0xff] }
   0xd   :  { %1278 = vmatpush3.msra.mxu1 %v147_v12  ;;  %1244 = vmatprep.subr.mxu0 %v1441_v0  ;;  %v1655_v33 = vld [vmem:[%s1964_s0] sm:$0xff]  ;;  %v785_v41 = vld [vmem:[%s1968_s5 + $0x78] sm:$0xff]  ;;  %v456_v42 = vld [vmem:[%s1967_s9 + $0x10] sm:$0xff] }
   0xe   :  { %1279 = vmatprep.subr.mxu1 %v1441_v0  ;;  %1245 = vmatpush3.msra.mxu0 %v60_v13  ;;  %v1660_v34 = vld [vmem:[%s1965_s1] sm:$0xff]  ;;  %v784_v43 = vld [vmem:[%s1968_s5 + $0x70] sm:$0xff]  ;;  %v457_v44 = vld [vmem:[%s1967_s9 + $0x18] sm:$0xff] }
   0xf   :  { %1280 = vmatpush3.msra.mxu1 %v146_v14  ;;  %1246 = vmatprep.subr.mxu0 %v1441_v0  ;;  %v223_v35 = vld [vmem:[%s1966_s6] sm:$0xff]  ;;  %v783_v45 = vld [vmem:[%s1968_s5 + $0x68] sm:$0xff]  ;;  %v781_v47 = vld [vmem:[%s1968_s5 + $0x58] sm:$0xff] }
  0x10   :  { %1281 = vmatprep.subr.mxu1 %v1441_v0  ;;  %1247 = vmatpush3.msra.mxu0 %v59_v15  ;;  %v454_v39 = vld [vmem:[%s1967_s9] sm:$0xff]  ;;  %v780_v48 = vld [vmem:[%s1968_s5 + $0x50] sm:$0xff]  ;;  %v779_v49 = vld [vmem:[%s1968_s5 + $0x48] sm:$0xff] }
  0x11   :  { %1282 = vmatpush3.msra.mxu1 %v145_v16  ;;  %1248 = vmatprep.subr.mxu0 %v1441_v0  ;;  %v782_v46 = vld [vmem:[%s1968_s5 + $0x60] sm:$0xff]  ;;  %v777_v51 = vld [vmem:[%s1968_s5 + $0x38] sm:$0xff]  ;;  %v776_v52 = vld [vmem:[%s1968_s5 + $0x30] sm:$0xff] }
  0x12   :  { %1283 = vmatprep.subr.mxu1 %v1441_v0  ;;  %1249 = vmatpush3.msra.mxu0 %v58_v17  ;;  %v778_v50 = vld [vmem:[%s1968_s5 + $0x40] sm:$0xff]  ;;  %v775_v53 = vld [vmem:[%s1968_s5 + $0x28] sm:$0xff]  ;;  %v773_v55 = vld [vmem:[%s1968_s5 + $0x18] sm:$0xff] }
  0x13   :  { %1284 = vmatpush3.msra.mxu1 %v144_v18  ;;  %1250 = vmatprep.subr.mxu0 %v1441_v0  ;;  %v774_v54 = vld [vmem:[%s1968_s5 + $0x20] sm:$0xff]  ;;  %v772_v56 = vld [vmem:[%s1968_s5 + $0x10] sm:$0xff]  ;;  %v771_v57 = vld [vmem:[%s1968_s5 + $0x8] sm:$0xff] }
  0x14   :  { %1285 = vmatprep.subr.mxu1 %v1441_v0  ;;  %1251 = vmatpush3.msra.mxu0 %v57_v19  ;;  %v770_v58 = vld [vmem:[%s1968_s5] sm:$0xff]  ;;  %v658_v62 = vld [vmem:[%s1971_s13 + $0x10] sm:$0xff]  ;;  %v659_v1 = vld [vmem:[%s1971_s13 + $0x18] sm:$0xff] }
  0x15   :  { %1286 = vmatpush3.msra.mxu1 %v143_v20  ;;  %1252 = vmatprep.subr.mxu0 %v1441_v0  ;;  %v227_v59 = vld [vmem:[%s1969_s7] sm:$0xff]  ;;  %v428_v63 = vld [vmem:[%s1972_s12 + $0x10] sm:$0xff]  ;;  %v429_v2 = vld [vmem:[%s1972_s12 + $0x18] sm:$0xff] }
  0x16   :  { %1287 = vmatprep.subr.mxu1 %v1441_v0  ;;  %1253 = vmatpush3.msra.mxu0 %v56_v21  ;;  %v961_v60 = vld [vmem:[%s1970_s11] sm:$0xff]  ;;  %v427_v3 = vld [vmem:[%s1972_s12 + $0x8] sm:$0xff]  ;;  %v229_v10 = vld [vmem:[%s1969_s7 + $0x10] sm:$0xff] }
  0x17   :  { %1288 = vmatpush3.msra.mxu1 %v142_v22  ;;  %1254 = vmatprep.subr.mxu0 %v1441_v0  ;;  %v426_v4 = vld [vmem:[%s1972_s12] sm:$0xff]  ;;  %v657_v5 = vld [vmem:[%s1971_s13 + $0x8] sm:$0xff]  ;;  %v230_v13 = vld [vmem:[%s1969_s7 + $0x18] sm:$0xff] }
  0x18   :  { %1289 = vmatprep.subr.mxu1 %v1441_v0  ;;  %1255 = vmatpush3.msra.mxu0 %v55_v23  ;;  %v656_v6 = vld [vmem:[%s1971_s13] sm:$0xff]  ;;  %v228_v9 = vld [vmem:[%s1969_s7 + $0x8] sm:$0xff]  ;;  %v699_v16 = vld [vmem:[%s1974_s3 + $0x78] sm:$0xff] }
  0x19   :  { %1290 = vmatpush3.msra.mxu1 %v141_v24  ;;  %1256 = vmatprep.subr.mxu0 %v1441_v0  ;;  %v458_v14 = vld [vmem:[%s1973_s10] sm:$0xff]  ;;  %v459_v15 = vld [vmem:[%s1973_s10 + $0x8] sm:$0xff]  ;;  %v460_v17 = vld [vmem:[%s1973_s10 + $0x10] sm:$0xff] }
  0x1a   :  { %1291 = vmatprep.subr.mxu1 %v1441_v0  ;;  %1257 = vmatpush3.msra.mxu0 %v54_v25  ;;  %v698_v18 = vld [vmem:[%s1974_s3 + $0x70] sm:$0xff]  ;;  %v461_v20 = vld [vmem:[%s1973_s10 + $0x18] sm:$0xff]  ;;  %v697_v21 = vld [vmem:[%s1974_s3 + $0x68] sm:$0xff] }
  0x1b   :  { %1292 = vmatpush3.msra.mxu1 %v140_v26  ;;  %1258 = vmatprep.subr.mxu0 %v1441_v0  ;;  %v696_v22 = vld [vmem:[%s1974_s3 + $0x60] sm:$0xff]  ;;  %v695_v24 = vld [vmem:[%s1974_s3 + $0x58] sm:$0xff]  ;;  %v694_v25 = vld [vmem:[%s1974_s3 + $0x50] sm:$0xff] }
  0x1c   :  { %1293 = vmatprep.subr.mxu1 %v1441_v0  ;;  %1259 = vmatpush3.msra.mxu0 %v53_v27  ;;  %v693_v27 = vld [vmem:[%s1974_s3 + $0x48] sm:$0xff] }
  0x1d   :  { %1294 = vmatpush3.msra.mxu1 %v139_v28  ;;  %1260 = vmatprep.subr.mxu0 %v1441_v0  ;;  %v692_v28 = vld [vmem:[%s1974_s3 + $0x40] sm:$0xff] }
  0x1e   :  { %1295 = vmatprep.subr.mxu1 %v1441_v0  ;;  %1261 = vmatpush3.msra.mxu0 %v52_v29 }
  0x1f   :  { %1296 = vmatpush3.msra.mxu1 %v138_v30  ;;  %1262 = vmatprep.subr.mxu0 %v1441_v0  ;;  %v691_v30 = vld [vmem:[%s1974_s3 + $0x38] sm:$0xff] }
  0x20   :  { %1297 = vmatprep.subr.mxu1 %v1441_v0  ;;  %1263 = vmatpush3.msra.mxu0 %v51_v31  ;;  %v690_v31 = vld [vmem:[%s1974_s3 + $0x30] sm:$0xff] }
  0x21   :  { %1298 = vmatpush3.msra.mxu1 %v137_v32  ;;  %1299 = vmatprep.mubr.msk.f32.mxu1 %vm1442_vm0, %v1441_v0 }
  0x22   :  { %1265 = vmatmul.mubr.f32.vlgmr.msra.gmra.mxu0 %v1655_v33  ;;  %1300 = vmatmul.mubr.f32.vlgmr.msra.gmra.mxu1 %v1660_v34 }
  0x23   :  { %1310 = vmatprep.subr.mxu1 %v1655_v33  ;;  %1312 = vmatprep.mubr.msk.f32.mxu1 %vm231_vm1, %v223_v35  ;;  %v688_v35 = vld [vmem:[%s1974_s3 + $0x20] sm:$0xff] }
  0x24   :  { %1311 = vmatpush3.msra.mxu1 %v1655_v33  ;;  %1304 = vmatprep.mubr.msk.f32.mxu0 %vm231_vm1, %v227_v59 }
  0x25   :  { %1326 = vmatprep.subr.mxu1 %v1660_v34  ;;  %1424 = vset.pattern.permute.xlu1 %v1443_v61 }
  0x26   :  { %1313 = vmatmul.mubr.msk.f32.vlgmr.msra.gmra.mxu1 %vm231_vm1, %v224_v36  ;;  %1423 = vset.pattern.permute.xlu0 %v1443_v61 }
  0x27   :  { %1315 = vmatprep.mubr.msk.f32.mxu1 %vm231_vm1, %v225_v37  ;;  %1327 = vmatpush3.msra.mxu1 %v1660_v34  ;;  %v687_v37 = vld [vmem:[%s1974_s3 + $0x18] sm:$0xff] }
  0x28   :  { %1369 = vmatprep.subr.mxu1 %v1441_v0  ;;  %672 = vperm.xlu1 %1424, %v658_v62   ;;  %v859_v62 = vld [vmem:[%s1975_s8 + $0x18] sm:$0xff] }
  0x29   :  { %442 = vperm.xlu0 %1423, %v428_v63  }
  0x2a   :  { %1316 = vmatmul.mubr.msk.f32.gmra.mxu1 %vm231_vm1, %v226_v38  ;;  %v686_v38 = vld [vmem:[%s1974_s3 + $0x10] sm:$0xff] }
  0x2b   :  { %1328 = vmatprep.mubr.msk.f32.mxu1 %vm231_vm1, %v454_v39 }
  0x2c   :  { %677 = vperm.xlu1 %1424, %v659_v1  }
  0x2d   :  { %447 = vperm.xlu0 %1423, %v429_v2  }
  0x2e   :  { %1329 = vmatmul.mubr.msk.f32.vlgmr.msra.gmra.mxu1 %vm231_vm1, %v455_v40  ;;  %v685_v40 = vld [vmem:[%s1974_s3 + $0x8] sm:$0xff] }
  0x2f   :  { %1370 = vmatpush3.msra.mxu1 %v785_v41  ;;  %1331 = vmatprep.mubr.msk.f32.mxu1 %vm231_vm1, %v456_v42  ;;  %v684_v41 = vld [vmem:[%s1974_s3] sm:$0xff] }
  0x30   :  { %1371 = vmatprep.subr.mxu1 %v1441_v0  ;;  %437 = vperm.xlu1 %1424, %v427_v3  }
  0x31   :  { %1372 = vmatpush3.msra.mxu1 %v784_v43  ;;  %432 = vperm.xlu0 %1423, %v426_v4  }
  0x32   :  { %1373 = vmatprep.subr.mxu1 %v1441_v0  ;;  %1332 = vmatmul.mubr.msk.f32.gmra.mxu1 %vm231_vm1, %v457_v44  ;;  %v962_v44 = vld [vmem:[%s1970_s11 + $0x8] sm:$0xff] }
  0x33   :  { %1374 = vmatpush3.msra.mxu1 %v783_v45  ;;  %1401 = vmatprep.mubr.msk.f32.mxu1 %vm1442_vm0, %v1441_v0  ;;  %v963_v45 = vld [vmem:[%s1970_s11 + $0x10] sm:$0xff] }
  0x34   :  { %1375 = vmatprep.subr.mxu1 %v1441_v0  ;;  %667 = vperm.xlu1 %1424, %v657_v5  }
  0x35   :  { %1376 = vmatpush3.msra.mxu1 %v782_v46  ;;  %662 = vperm.xlu0 %1423, %v656_v6  }
  0x36   :  { %1377 = vmatprep.subr.mxu1 %v1441_v0 }
  0x37   :  { %1378 = vmatpush3.msra.mxu1 %v781_v47 }
  0x38   :  { %1379 = vmatprep.subr.mxu1 %v1441_v0 }
  0x39   :  { %1380 = vmatpush3.msra.mxu1 %v780_v48 }
  0x3a   :  { %1381 = vmatprep.subr.mxu1 %v1441_v0 }
  0x3b   :  { %1382 = vmatpush3.msra.mxu1 %v779_v49 }
  0x3c   :  { %1383 = vmatprep.subr.mxu1 %v1441_v0 }
  0x3d   :  { %1384 = vmatpush3.msra.mxu1 %v778_v50 }
  0x3e   :  { %1385 = vmatprep.subr.mxu1 %v1441_v0 }
  0x3f   :  { %1386 = vmatpush3.msra.mxu1 %v777_v51 }
  0x40   :  { %1387 = vmatprep.subr.mxu1 %v1441_v0 }
  0x41   :  { %1388 = vmatpush3.msra.mxu1 %v776_v52 }
  0x42   :  { %1389 = vmatprep.subr.mxu1 %v1441_v0 }
  0x43   :  { %1390 = vmatpush3.msra.mxu1 %v775_v53 }
  0x44   :  { %1391 = vmatprep.subr.mxu1 %v1441_v0 }
  0x45   :  { %1392 = vmatpush3.msra.mxu1 %v774_v54 }
  0x46   :  { %1393 = vmatprep.subr.mxu1 %v1441_v0 }
  0x47   :  { %1394 = vmatpush3.msra.mxu1 %v773_v55 }
  0x48   :  { %1395 = vmatprep.subr.mxu1 %v1441_v0 }
  0x49   :  { %1396 = vmatpush3.msra.mxu1 %v772_v56 }
  0x4a   :  { %1397 = vmatprep.subr.mxu1 %v1441_v0 }
  0x4b   :  { %1398 = vmatpush3.msra.mxu1 %v771_v57  ;;  %v857_v57 = vld [vmem:[%s1975_s8 + $0x8] sm:$0xff] }
  0x4c   :  { %1399 = vmatprep.subr.mxu1 %v1441_v0 }
  0x4d   :  { %1400 = vmatpush3.msra.mxu1 %v770_v58  ;;  %v858_v58 = vld [vmem:[%s1975_s8 + $0x10] sm:$0xff] }
  0x4e   :  { %1402 = vmatmul.mubr.f32.vlgmr.msra.gmra.mxu1 %v1655_v33  ;;  %v689_v33 = vld [vmem:[%s1974_s3 + $0x28] sm:$0xff] }
  0x4f   :  { %1414 = vmatprep.mubr.msk.f32.mxu1 %vm231_vm1, %v961_v60 }
  0xa3   :  { %v673_v55 = vpop.permute.xlu1 %672 }
  0xa7   :  { %v678_v1 = vpop.permute.xlu1 %677 }
  0xe2   :  { %v133_v7 = vpop.f32.mrf.mxu0  ;;  %v219_v8 = vpop.f32.mrf.mxu1 }
  0xe3   :  { %1302 = vmatprep.subr.mxu0 %v133_v7 }
  0xe4   :  { %v1266_v11 = vpop.f32.mrf.mxu0  ;;  %1303 = vmatpush3.msra.mxu0 %v133_v7  ;;  %v1301_v12 = vpop.f32.mrf.mxu1 }
  0xe5   :  { %1305 = vmatmul.mubr.msk.f32.vlgmr.msra.gmra.mxu0 %vm231_vm1, %v228_v9  ;;  %1318 = vmatprep.subr.mxu0 %v219_v8  ;;  %v443_v11 = vpop.permute.xlu0 %442 }
  0xe6   :  { %1319 = vmatpush3.msra.mxu0 %v219_v8  ;;  %1307 = vmatprep.mubr.msk.f32.mxu0 %vm231_vm1, %v229_v10  ;;  %v1833_v19 = vpop.f32.mrf.mxu1 }
  0xe7   :  { %1334 = vmatprep.subr.mxu0 %v1441_v0 }
  0xe8   :  { %v1848_v23 = vpop.f32.mrf.mxu1 }
  0xe9   :  { %1308 = vmatmul.mubr.msk.f32.gmra.mxu0 %vm231_vm1, %v230_v13 }
  0xea   :  { %1320 = vmatprep.mubr.msk.f32.mxu0 %vm231_vm1, %v458_v14  ;;  %v1860_v26 = vpop.f32.mrf.mxu1 }
  0xec   :  { %v1870_v29 = vpop.f32.mrf.mxu1 }
  0xed   :  { %1321 = vmatmul.mubr.msk.f32.vlgmr.msra.gmra.mxu0 %vm231_vm1, %v459_v15  ;;  %v448_v15 = vpop.permute.xlu0 %447 }
  0xee   :  { %1335 = vmatpush3.msra.mxu0 %v699_v16  ;;  %1323 = vmatprep.mubr.msk.f32.mxu0 %vm231_vm1, %v460_v17  ;;  %v1880_v32 = vpop.f32.mrf.mxu1  ;;  %v438_v17 = vpop.permute.xlu1 %437 }
  0xef   :  { %1336 = vmatprep.subr.mxu0 %v1441_v0 }
  0xf0   :  { %1337 = vmatpush3.msra.mxu0 %v698_v18  ;;  %v1890_v36 = vpop.f32.mrf.mxu1 }
  0xf1   :  { %1338 = vmatprep.subr.mxu0 %v1441_v0  ;;  %1324 = vmatmul.mubr.msk.f32.gmra.mxu0 %vm231_vm1, %v461_v20  ;;  %v433_v18 = vpop.permute.xlu0 %432 }
  0xf2   :  { %1339 = vmatpush3.msra.mxu0 %v697_v21  ;;  %1366 = vmatprep.mubr.msk.f32.mxu0 %vm1442_vm0, %v1441_v0  ;;  %v1333_v39 = vpop.f32.mrf.mxu1  ;;  %v668_v21 = vpop.permute.xlu1 %667 }
  0xf3   :  { %1340 = vmatprep.subr.mxu0 %v1441_v0 }
  0xf4   :  { %1341 = vmatpush3.msra.mxu0 %v696_v22  ;;  %v647_v42 = vpop.f32.mrf.mxu1 }
  0xf5   :  { %1342 = vmatprep.subr.mxu0 %v1441_v0 }
  0xf6   :  { %1343 = vmatpush3.msra.mxu0 %v695_v24  ;;  %v663_v24 = vpop.permute.xlu0 %662 }
  0xf7   :  { %1344 = vmatprep.subr.mxu0 %v1441_v0 }
  0xf8   :  { %1345 = vmatpush3.msra.mxu0 %v694_v25 }
  0xf9   :  { %1346 = vmatprep.subr.mxu0 %v1441_v0 }
  0xfa   :  { %1347 = vmatpush3.msra.mxu0 %v693_v27 }
  0xfb   :  { %1348 = vmatprep.subr.mxu0 %v1441_v0 }
  0xfc   :  { %1349 = vmatpush3.msra.mxu0 %v692_v28 }
  0xfd   :  { %1350 = vmatprep.subr.mxu0 %v1441_v0 }
  0xfe   :  { %1351 = vmatpush3.msra.mxu0 %v691_v30 }
  0xff   :  { %1352 = vmatprep.subr.mxu0 %v1441_v0 }
 0x100   :  { %1353 = vmatpush3.msra.mxu0 %v690_v31 }
 0x101   :  { %1354 = vmatprep.subr.mxu0 %v1441_v0 }
 0x102   :  { %1355 = vmatpush3.msra.mxu0 %v689_v33 }
 0x103   :  { %1356 = vmatprep.subr.mxu0 %v1441_v0 }
 0x104   :  { %1357 = vmatpush3.msra.mxu0 %v688_v35 }
 0x105   :  { %1358 = vmatprep.subr.mxu0 %v1441_v0 }
 0x106   :  { %1359 = vmatpush3.msra.mxu0 %v687_v37 }
 0x107   :  { %1360 = vmatprep.subr.mxu0 %v1441_v0 }
 0x108   :  { %1361 = vmatpush3.msra.mxu0 %v686_v38 }
 0x109   :  { %1362 = vmatprep.subr.mxu0 %v1441_v0 }
 0x10a   :  { %1363 = vmatpush3.msra.mxu0 %v685_v40 }
 0x10b   :  { %1364 = vmatprep.subr.mxu0 %v1441_v0  ;;  %v964_v0 = vld [vmem:[%s1970_s11 + $0x18] sm:$0xff] }
 0x10c   :  { %1365 = vmatpush3.msra.mxu0 %v684_v41 }
 0x10d   :  { %1367 = vmatmul.mubr.f32.vlgmr.msra.gmra.mxu0 %v1660_v34  ;;  %v856_v34 = vld [vmem:[%s1975_s8] sm:$0xff] }
 0x10e   :  { %v852_v43 = vpop.f32.mrf.mxu1  ;;  %1406 = vmatprep.mubr.msk.f32.mxu0 %vm231_vm1, %v856_v34 }
 0x10f   :  { %1412 = vmatprep.subr.mxu1 %v852_v43 }
 0x110   :  { %1413 = vmatpush3.msra.mxu1 %v852_v43  ;;  %v1403_v46 = vpop.f32.mrf.mxu1 }
 0x111   :  { %1415 = vmatmul.mubr.msk.f32.vlgmr.msra.gmra.mxu1 %vm231_vm1, %v962_v44 }
 0x112   :  { %1417 = vmatprep.mubr.msk.f32.mxu1 %vm231_vm1, %v963_v45 }
 0x115   :  { %1418 = vmatmul.mubr.msk.f32.gmra.mxu1 %vm231_vm1, %v964_v0 }
 0x1a5   :  { %v1926_v47 = vpop.f32.mrf.mxu0 }
 0x1a7   :  { %v1928_v48 = vpop.f32.mrf.mxu0 }
 0x1a9   :  { %v1309_v49 = vpop.f32.mrf.mxu0 }
 0x1ab   :  { %v320_v50 = vpop.f32.mrf.mxu0 }
 0x1ac   :  { %v418_v38 = vadd.f32 %v1870_v29, %v320_v50  ;;  %v408_v29 = vadd.f32 %v1848_v23, %v1928_v48 }
 0x1ad   :  { %v1322_v51 = vpop.f32.mrf.mxu0 }
 0x1ae   :  { %v643_v20 = vadd.f32 %v1880_v32, %v1322_v51  ;;  %v423_v32 = vadd.f32 %v1860_v26, %v1309_v49  ;;  %v452_v43 = vadd.f32 %v443_v11, %v418_v38  ;;  %v413_v26 = vadd.f32 %v1833_v19, %v1926_v47 }
 0x1af   :  { %v540_v52 = vpop.f32.mrf.mxu0  ;;  %v450_v50 = vadd.f32 %v433_v18, %v408_v29 }
 0x1b0   :  { %v638_v22 = vadd.f32 %v1890_v36, %v540_v52  ;;  %v681_v25 = vadd.f32 %v668_v21, %v643_v20  ;;  %v453_v40 = vadd.f32 %v448_v15, %v423_v32  ;;  %v451_v49 = vadd.f32 %v438_v17, %v413_v26 }
 0x1b1   :  { %v1325_v53 = vpop.f32.mrf.mxu0 }
 0x1b2   :  { %v653_v60 = vadd.f32 %v1333_v39, %v1325_v53  ;;  %v680_v27 = vadd.f32 %v663_v24, %v638_v22 }
 0x1b3   :  { %v550_v54 = vpop.f32.mrf.mxu0 }
 0x1b4   :  { %v648_v63 = vadd.f32 %v647_v42, %v550_v54  ;;  %v683_v3 = vadd.f32 %v678_v1, %v653_v60 }
 0x1b6   :  { %v682_v6 = vadd.f32 %v673_v55, %v648_v63 }
 0x1cd   :  { %v766_v56 = vpop.f32.mrf.mxu0 }
 0x1ce   :  { %1404 = vmatprep.subr.mxu0 %v766_v56 }
 0x1cf   :  { %v1368_v59 = vpop.f32.mrf.mxu0  ;;  %1405 = vmatpush3.msra.mxu0 %v766_v56 }
 0x1d0   :  { %1407 = vmatmul.mubr.msk.f32.vlgmr.msra.gmra.mxu0 %vm231_vm1, %v857_v57 }
 0x1d1   :  { %v1416_v61 = vpop.f32.mrf.mxu1  ;;  %1409 = vmatprep.mubr.msk.f32.mxu0 %vm231_vm1, %v858_v58 }
 0x1d2   :  { %v1063_v28 = vadd.f32 %v1416_v61, %v681_v25 }
 0x1d3   :  { %v1043_v2 = vpop.f32.mrf.mxu1 }
 0x1d4   :  { %1410 = vmatmul.mubr.msk.f32.gmra.mxu0 %vm231_vm1, %v859_v62  ;;  %v1062_v31 = vadd.f32 %v1043_v2, %v680_v27 }
 0x1d5   :  { %v1419_v4 = vpop.f32.mrf.mxu1 }
 0x1d6   :  { %v1065_v5 = vadd.f32 %v1419_v4, %v683_v3 }
 0x1d7   :  { %v1053_v7 = vpop.f32.mrf.mxu1 }
 0x1d8   :  { %v1133_v8 = vmul.f32 -1.442695, %v1065_v5  ;;  %v1064_v9 = vadd.f32 %v1053_v7, %v682_v6 }
 0x1da   :  { %1425 = vpow2.f32 %v1133_v8  ;;  %v1132_v10 = vmul.f32 -1.442695, %v1064_v9 }
 0x1dc   :  { %1427 = vpow2.f32 %v1132_v10 }
 0x1e7   :  { %v1426_v12 = vpop.eup %1425 }
 0x1e8   :  { %v1089_v13 = vadd.f32 1.0, %v1426_v12 }
 0x1e9   :  { %v1428_v14 = vpop.eup %1427 }
 0x1ea   :  { %1429 = vrcp.f32 %v1089_v13  ;;  %v1088_v16 = vadd.f32 1.0, %v1428_v14 }
 0x1ec   :  { %1431 = vrcp.f32 %v1088_v16 }
 0x1f7   :  { %v1430_v30 = vpop.eup %1429 }
 0x1f8   :  { %v1095_v33 = vmul.f32 %v1430_v30, %v1063_v28 }
 0x1f9   :  { %v1432_v35 = vpop.eup %1431 }
 0x1fa   :  { %1097 = vst [vmem:[%s1976_s15 + $0x8] sm:$0xff] %v1095_v33  ;;  %v1094_v37 = vmul.f32 %v1432_v35, %v1062_v31 }
 0x1fc   :  { %1096 = vst [vmem:[%s1976_s15] sm:$0xff] %v1094_v37 }
 0x290   :  { %v1408_v36 = vpop.f32.mrf.mxu0 }
 0x291   :  { %v958_v54 = vadd.f32 %v1408_v36, %v451_v49 }
 0x292   :  { %v938_v39 = vpop.f32.mrf.mxu0 }
 0x293   :  { %v957_v56 = vadd.f32 %v938_v39, %v450_v50 }
 0x294   :  { %v1411_v41 = vpop.f32.mrf.mxu0 }
 0x295   :  { %v960_v42 = vadd.f32 %v1411_v41, %v453_v40 }
 0x296   :  { %v948_v44 = vpop.f32.mrf.mxu0 }
 0x297   :  { %v1131_v45 = vmul.f32 -1.442695, %v960_v42  ;;  %v959_v46 = vadd.f32 %v948_v44, %v452_v43 }
 0x299   :  { %1433 = vpow2.f32 %v1131_v45  ;;  %v1130_v0 = vmul.f32 -1.442695, %v959_v46 }
 0x29b   :  { %1435 = vpow2.f32 %v1130_v0 }
 0x2a6   :  { %v1434_v34 = vpop.eup %1433 }
 0x2a7   :  { %v1073_v51 = vadd.f32 1.0, %v1434_v34 }
 0x2a8   :  { %v1436_v52 = vpop.eup %1435 }
 0x2a9   :  { %1437 = vrcp.f32 %v1073_v51  ;;  %v1072_v53 = vadd.f32 1.0, %v1436_v52 }
 0x2ab   :  { %1439 = vrcp.f32 %v1072_v53 }
 0x2b6   :  { %v1438_v55 = vpop.eup %1437 }
 0x2b7   :  { %v1079_v57 = vmul.f32 %v1438_v55, %v958_v54 }
 0x2b8   :  { %v1440_v58 = vpop.eup %1439 }
 0x2b9   :  { %1081 = vst [vmem:[%s1977_s14 + $0x8] sm:$0xff] %v1079_v57  ;;  %v1078_v59 = vmul.f32 %v1440_v58, %v957_v56 }
 0x2bb   :  { %1080 = vst [vmem:[%s1977_s14] sm:$0xff] %v1078_v59 }

</bundles_post_ra>
